<compile_context>
chip_gen: v5e
topology: v5e:2x2
jax: 0.10.0
libtpu: 0.0.40
codegen_flags: <defaults>
</compile_context>

<pallas_src>
import jax
import jax.numpy as jnp
from jax import lax
from jax.experimental import pallas as pl
from jax.experimental.pallas import tpu as pltpu


def _mlp_nids_kernel(x_ref, w1_ref, wb_ref, b2_ref, o_ref):
    # ---- Linear(78, 128): MXU matmul, f32 accumulation ----------------------
    x = x_ref[...].astype(jnp.float32)        # no-op for f32 inputs
    h = jnp.dot(x, w1_ref[...], preferred_element_type=jnp.float32)   # (TM,128)
    h = h + wb_ref[0:1, :]                    # + b1  (broadcast over sublanes)
    # ---- LeakyReLU(0.2): slope < 1  =>  leaky_relu(h) == max(h, 0.2*h) ------
    h = jnp.maximum(h, 0.2 * h)               # single VALU max
    # ---- Linear(128, 1) as a lane-dense MXU contraction ---------------------
    # (1,128) . (TM,128)^T -> (1,TM): keeps the reduction on the MXU (instead
    # of the XLU lane-sum) and yields z lane-major for the epilogue/store.
    z = lax.dot_general(wb_ref[1:2, :], h,
                        dimension_numbers=(((1,), (1,)), ((), ())),
                        preferred_element_type=jnp.float32)            # (1, TM)
    z = z + b2_ref[0]                         # scalar bias from SMEM
    # ---- Sigmoid (exact): exp on EUP, one divide -- negligible lane-dense ---
    o_ref[...] = (1.0 / (1.0 + jnp.exp(-z))).astype(o_ref.dtype)


def _round_up(n, m):
    return ((n + m - 1) // m) * m


def mlp_nids_forward(x, w1, b1, w2, b2, *, tm=4096):
    """Fused MLP_NIDS forward.  x: (B, 78) -> (B, 1) float32."""
    B, f_in = x.shape
    hidden = w1.shape[1]

    w1_f32 = w1.astype(jnp.float32)                                   # resident (78,128)
    wb = jnp.stack([b1.reshape(hidden),
                    w2.reshape(hidden)]).astype(jnp.float32)          # resident (2,128): [b1; w2^T]
    b2_s = b2.reshape(1).astype(jnp.float32)                          # SMEM scalar

    # Batch tile: multiple of 8 sublanes, clamped to the (rounded-up) batch.
    tm = _round_up(max(8, min(int(tm), B)), 8)
    # Ensure >= 2 grid steps when possible so the "parallel" batch axis can
    # actually be split across v7x's two TensorCores (no-op on v5e/v6e).
    if pl.cdiv(B, tm) < 2 and B > 8:
        tm = _round_up(pl.cdiv(B, 2), 8)
    num_blocks = pl.cdiv(B, tm)

    out = pl.pallas_call(
        _mlp_nids_kernel,
        out_shape=jax.ShapeDtypeStruct((num_blocks, 1, tm), jnp.float32),
        grid=(num_blocks,),
        in_specs=[
            pl.BlockSpec((tm, f_in), lambda i: (i, 0)),            # streamed x (no wrapper cast)
            pl.BlockSpec((f_in, hidden), lambda i: (0, 0)),        # resident W1
            pl.BlockSpec((2, hidden), lambda i: (0, 0)),           # resident [b1; w2^T]
            pl.BlockSpec(memory_space=pltpu.MemorySpace.SMEM),     # scalar b2
        ],
        # Lane-dense per-block output row; block dims equal the array's last
        # two dims, so any tm (multiple of 8) is layout-legal.
        out_specs=pl.BlockSpec((None, 1, tm), lambda i: (i, 0, 0)),
        compiler_params=pltpu.CompilerParams(
            dimension_semantics=("parallel",)),
    )(x, w1_f32, wb, b2_s)

    # Un-pad the lane-dense per-block rows back to (B, 1).  (Padded tail lanes
    # may hold garbage from the partial x block; they are sliced away here.)
    return out.reshape(num_blocks * tm)[:B].reshape(B, 1)


def init_params(key):
    """torch.nn.Linear-style init: U[-1/sqrt(fan_in), 1/sqrt(fan_in)]."""
    k1, k2, k3, k4 = jax.random.split(key, 4)
    lim1 = 1.0 / jnp.sqrt(78.0)
    lim2 = 1.0 / jnp.sqrt(128.0)
    w1 = jax.random.uniform(k1, (78, 128), jnp.float32, -lim1, lim1)
    b1 = jax.random.uniform(k2, (128,), jnp.float32, -lim1, lim1)
    w2 = jax.random.uniform(k3, (128, 1), jnp.float32, -lim2, lim2)
    b2 = jax.random.uniform(k4, (1,), jnp.float32, -lim2, lim2)
    return w1, b1, w2, b2


if __name__ == "__main__":
    key = jax.random.PRNGKey(0)
    k_x, k_p = jax.random.split(key)

    # Small, non-tile-aligned batch: auto tile clamp gives 2 grid steps
    # (tm=152) including a padded partial tail block.
    B = 300
    x = jax.random.normal(k_x, (B, 78), jnp.float32)
    w1, b1, w2, b2 = init_params(k_p)

    out = mlp_nids_forward(x, w1, b1, w2, b2)
    out = jax.block_until_ready(out)

    # f32 reference (same math as the PyTorch module).
    h_ref = jnp.dot(x, w1, precision=lax.Precision.HIGHEST) + b1
    h_ref = jnp.where(h_ref >= 0.0, h_ref, 0.2 * h_ref)
    ref = jax.nn.sigmoid(jnp.dot(h_ref, w2, precision=lax.Precision.HIGHEST) + b2)

    assert out.shape == (B, 1)
    err = float(jnp.max(jnp.abs(out - ref)))
    assert err < 5e-3, f"max abs error {err}"
    print("KERNEL_OK")
</pallas_src>

<mosaic_0001>
module attributes {stable_mosaic.version = 11 : i64} {
  func.func @_mlp_nids_kernel(%arg0: i32, %arg1: memref<152x78xf32, #tpu.memory_space<vmem>>, %arg2: memref<78x128xf32, #tpu.memory_space<vmem>>, %arg3: memref<2x128xf32, #tpu.memory_space<vmem>>, %arg4: memref<1xf32, #tpu.memory_space<smem>>, %arg5: memref<1x1x152xf32, #tpu.memory_space<vmem>>) attributes {dimension_semantics = [#tpu.dimension_semantics<parallel>], iteration_bounds = array<i64: 2>, scalar_prefetch = 0 : i64, scratch_operands = 0 : i64, tpu.core_type = #tpu.core_type<tc>, window_params = [{transform_indices = @transform_0, window_bounds = array<i64: 152, 78>}, {pipeline_mode = #tpu.pipeline_mode<synchronous>, transform_indices = @transform_1, window_bounds = array<i64: 78, 128>}, {pipeline_mode = #tpu.pipeline_mode<synchronous>, transform_indices = @transform_2, window_bounds = array<i64: 2, 128>}, {transform_indices = @transform_3, window_bounds = array<i64: 1>}, {transform_indices = @transform_4, window_bounds = array<i64: 1, 1, 152>}]} {
    %c0 = arith.constant 0 : index
    %c0_0 = arith.constant 0 : index
    %0 = vector.load %arg1[%c0, %c0_0] : memref<152x78xf32, #tpu.memory_space<vmem>>, vector<152x78xf32>
    %c0_1 = arith.constant 0 : index
    %c0_2 = arith.constant 0 : index
    %1 = vector.load %arg2[%c0_1, %c0_2] : memref<78x128xf32, #tpu.memory_space<vmem>>, vector<78x128xf32>
    %cst = arith.constant dense<0.000000e+00> : vector<152x128xf32>
    %2 = tpu.matmul %0, %1, %cst {dimension_numbers = #tpu.dot_dimension_numbers<[1], [0], [0], [1], [0, 0, 1, 1], [], []>} : vector<152x78xf32>, vector<78x128xf32>, vector<152x128xf32> -> vector<152x128xf32>
    %c0_3 = arith.constant 0 : index
    %c0_4 = arith.constant 0 : index
    %3 = vector.load %arg3[%c0_3, %c0_4] : memref<2x128xf32, #tpu.memory_space<vmem>>, vector<1x128xf32>
    %4 = vector.broadcast %3 : vector<1x128xf32> to vector<152x128xf32>
    %5 = arith.addf %2, %4 : vector<152x128xf32>
    %cst_5 = arith.constant 2.000000e-01 : f32
    %6 = vector.broadcast %cst_5 : f32 to vector<152x128xf32>
    %7 = arith.mulf %6, %5 : vector<152x128xf32>
    %8 = arith.maximumf %5, %7 : vector<152x128xf32>
    %c1 = arith.constant 1 : index
    %c0_6 = arith.constant 0 : index
    %9 = vector.load %arg3[%c1, %c0_6] : memref<2x128xf32, #tpu.memory_space<vmem>>, vector<1x128xf32>
    %cst_7 = arith.constant dense<0.000000e+00> : vector<1x152xf32>
    %10 = tpu.matmul %9, %8, %cst_7 {dimension_numbers = #tpu.dot_dimension_numbers<[1], [1], [0], [0], [0, 0, 1, 0], [], []>} : vector<1x128xf32>, vector<152x128xf32>, vector<1x152xf32> -> vector<1x152xf32>
    %c0_8 = arith.constant 0 : index
    %11 = memref.load %arg4[%c0_8] : memref<1xf32, #tpu.memory_space<smem>>
    %12 = vector.broadcast %11 : f32 to vector<1x152xf32>
    %13 = arith.addf %10, %12 : vector<1x152xf32>
    %cst_9 = arith.constant 0.000000e+00 : f32
    %14 = vector.broadcast %cst_9 : f32 to vector<1x152xf32>
    %15 = arith.subf %14, %13 : vector<1x152xf32>
    %16 = math.exp %15 : vector<1x152xf32>
    %cst_10 = arith.constant 1.000000e+00 : f32
    %17 = vector.broadcast %cst_10 : f32 to vector<1x152xf32>
    %18 = arith.addf %17, %16 : vector<1x152xf32>
    %cst_11 = arith.constant 1.000000e+00 : f32
    %19 = vector.broadcast %cst_11 : f32 to vector<1x152xf32>
    %20 = arith.divf %19, %18 : vector<1x152xf32>
    %c0_12 = arith.constant 0 : index
    %c0_13 = arith.constant 0 : index
    %c0_14 = arith.constant 0 : index
    %21 = vector.load %arg5[%c0_12, %c0_13, %c0_14] : memref<1x1x152xf32, #tpu.memory_space<vmem>>, vector<1x1x152xf32>
    %22 = vector.shape_cast %21 : vector<1x1x152xf32> to vector<1x152xf32>
    %23 = vector.shape_cast %20 : vector<1x152xf32> to vector<1x1x152xf32>
    tpu.vector_store %arg5[%c0_12, %c0_13, %c0_14], %23 {strides = array<i32>} : memref<1x1x152xf32, #tpu.memory_space<vmem>>, vector<1x1x152xf32>,
    return
  }
  func.func @transform_0(%arg0: i32) -> (i32, i32) {
    %c0_i32 = arith.constant 0 : i32
    %c0_i32_0 = arith.constant 0 : i32
    return %arg0, %c0_i32 : i32, i32
  }
  func.func @transform_1(%arg0: i32) -> (i32, i32) {
    %c0_i32 = arith.constant 0 : i32
    %c0_i32_0 = arith.constant 0 : i32
    %c0_i32_1 = arith.constant 0 : i32
    return %c0_i32, %c0_i32_0 : i32, i32
  }
  func.func @transform_2(%arg0: i32) -> (i32, i32) {
    %c0_i32 = arith.constant 0 : i32
    %c0_i32_0 = arith.constant 0 : i32
    %c0_i32_1 = arith.constant 0 : i32
    return %c0_i32, %c0_i32_0 : i32, i32
  }
  func.func @transform_3(%arg0: i32) -> i32 {
    %c0_i32 = arith.constant 0 : i32
    %c0_i32_0 = arith.constant 0 : i32
    return %c0_i32 : i32
  }
  func.func @transform_4(%arg0: i32) -> (i32, i32, i32) {
    %c0_i32 = arith.constant 0 : i32
    %c0_i32_0 = arith.constant 0 : i32
    %c0_i32_1 = arith.constant 0 : i32
    return %arg0, %c0_i32, %c0_i32_0 : i32, i32, i32
  }
}

</mosaic_0001>

<bundles_post_ra>
// kernel: tpu_custom_call.1
= control target key start
LH: loop header
LB: loop body
LE: loop exit
PB: predicated region body
PF: predicated region fallthrough
CT: control target
= control target key end

     0   :  { %s964_s0 = inlined_call_operand.vmem [shape: f32[300,78], index: 0, kind: input, shape index: {}]   ;;  %s965_s1 = inlined_call_operand.vmem [shape: f32[78,128], index: 1, kind: input, shape index: {}]   ;;  %s966_s2 = inlined_call_operand.vmem [shape: f32[2,128], index: 2, kind: input, shape index: {}]   ;;  %s967_s3 = inlined_call_operand.<no memory space> [shape: f32[1], index: 3, kind: input, shape index: {}]   ;;  %s968_s4 = inlined_call_operand.hbm [shape: f32[2,1,152], index: 4, kind: output, shape index: {}]  }
   0x1   :  { %9 = sst [smem:[#allocation2]] %s967_s3 }
   0x2   :  { %10 = vsyncpa [#allocation4], 0 }
   0x3   :  { %12 = vsyncpa [#allocation4 + $0x1], 0  ;;  %s761_s17 = smov 0   ;;  %s763_s18 = smov 0  }
   0x4   :  { %s765_s19 = smov 0   ;;  %s767_s20 = smov 0  }
   0x5 LB: > { %s782_s3 = sadd.s32 4294967295, %s731_s20   ;;  %s571_s21 = sadd.s32 4294967294, %s731_s20   ;;  %s731_s20 = sphi %s767_s20, %s974_s20   ;;  %s727_s19 = sphi %s765_s19, %s973_s19   ;;  %s723_s18 = sphi %s763_s18, %s972_s18   ;;  %s719_s17 = sphi %s761_s17, %s971_s17  }
   0x6   : > { %s786_s22 = sadd.s32 1, %s731_s20   ;;  %s114_s23 = sadd.s32 1, %s727_s19 }
   0x7   : > { %s111_s24 = ssub.s32 %s731_s20, %s786_s22  ;;  %p124_p0 = scmp.ne.s32.totalorder %s727_s19, %s723_s18 }
   0x8   : > { %p112_p1 = scmp.eq.s32.totalorder %s111_s24, 0  ;;  %p125_p2 = scmp.eq.s32.totalorder %s782_s3, 1 }
   0x9   : > { %p130_p3 = scmp.ne.s32.totalorder %s723_s18, %s719_s17  ;;  %p131_p4 = scmp.eq.s32.totalorder %s571_s21, 1 }
   0xa   : > { %s797_s25 = scalar_select %p112_p1, %s727_s19, %s114_s23  }
   0xb   : > { %p799_p5 = por %p125_p2, %p124_p0  ;;  %p803_p6 = por %p131_p4, %p130_p3 }
   0xc   : > { %p574_p7 = scmp.ge.s32.totalorder %s731_s20, 1  ;;  %p167_p8 = scmp.lt.s32.totalorder %s731_s20, 3 }
   0xe   : > { %p168_p9 = pnand %p574_p7, %p167_p8 }
   0xf   : > { %s193_s6 = smul.u32 (!%p168_p9), 19, %s782_s3  ;;  %s405_s13 = sld [smem:[#allocation2]] (!%p168_p9) }
  0x10   : > { %171 = sbr.rel (%p168_p9) target bundleno = 428 (0x1ac), region = 36  ;;  %s190_s14 = sand.u32 (!%p168_p9), 1, %s723_s18  }
  0x11   : > { %p194_p10 = scmp.lt.s32.totalorder (!%p168_p9), %s193_s6, 37  ;;  %s925_s15 = sshll.u32 (!%p168_p9), %s190_s14, 1 }
  0x12   : > { %s598_s16 = sshll.u32 (!%p168_p9), %s782_s3, 1  ;;  %s192_s28 = scalar_lea.vmem (!%p168_p9), [#allocation3], %s925_s15 }
  0x13   : > { %s507_s24 = scalar_lea.hbm (!%p168_p9), %s968_s4, %s598_s16  ;;  %s932_s29 = sshll.u32 (!%p168_p9), %s192_s28, 4  ;;  %s510_s29 = int_to_ptr.vmem [resolvable:$true] %s932_s29 }
  0x14   : > { %s511_s3 = sshll.u32 (!%p168_p9), %s507_s24, 4  ;;  %s497_s30 = scalar_lea.sflag (!%p168_p9), [#allocation4], %s190_s14  ;;  %s512_s3 = int_to_ptr.hbm [resolvable:$true] %s511_s3 }
  0x15   : > { %v227_v0 = vld [vmem:[%s965_s1 + $0x48] sm:$0x3f]  ;;  %vm288_vm0 = vcmask 1045504   ;;  %v226_v1 = vld [vmem:[%s965_s1 + $0x40] sm:$0xff]  ;;  %v225_v2 = vld [vmem:[%s965_s1 + $0x38] sm:$0xff]  ;;  %s976_s6 = smov (!%p194_p10, %s193_s6), 37 }
  0x16   : > { %602 = vmatpush.msk.msra.mxu3 %vm288_vm0, %v227_v0  ;;  %601 = vmatpush.msk.msra.mxu2 %vm288_vm0, %v227_v0  ;;  %v224_v3 = vld [vmem:[%s965_s1 + $0x30] sm:$0xff]  ;;  %v223_v4 = vld [vmem:[%s965_s1 + $0x28] sm:$0xff]  ;;  %v222_v5 = vld [vmem:[%s965_s1 + $0x20] sm:$0xff]  ;;  %s576_s21 = sshll.u32 %s976_s6, 3  ;;  %vm230_vm1 = vcmask 637952   ;;  %vm488_vm9 = vcmask 1040384  }
  0x17   : > { %577 = vmatpush.msk.msra.mxu0 %vm288_vm0, %v227_v0  ;;  %v221_v6 = vld [vmem:[%s965_s1 + $0x18] sm:$0xff]  ;;  %v220_v7 = vld [vmem:[%s965_s1 + $0x10] sm:$0xff]  ;;  %v219_v8 = vld [vmem:[%s965_s1 + $0x8] sm:$0xff]  ;;  %s840_s7 = scalar_lea.vmem %s964_s0, %s576_s21  ;;  %s683_s5 = sshra.s32 %s512_s3, 4  ;;  %s684_s5 = int_to_ptr.hbm [resolvable:$true] %s683_s5 }
  0x18   : > { %604 = vmatpush.msra.mxu3 %v226_v1  ;;  %603 = vmatpush.msra.mxu2 %v226_v1  ;;  %v218_v9 = vld [vmem:[%s965_s1] sm:$0xff]  ;;  %v206_v11 = vld [vmem:[%s840_s7 + $0x38] sm:$0xff]  ;;  %v212_v13 = vld [vmem:[%s840_s7 + $0x68] sm:$0xff]  ;;  %s689_s9 = scalar_lea.hbm %s968_s4, 4  ;;  %p690_p0 = scmp.lt.s32.totalorder %s684_s5, %s968_s4 }
  0x19   : > { %299 = vmatpush.msra.mxu0 %v226_v1  ;;  %v211_v10 = vld [vmem:[%s840_s7 + $0x60] sm:$0xff]  ;;  %v200_v15 = vld [vmem:[%s840_s7 + $0x8] sm:$0xff]  ;;  %v213_v16 = vld [vmem:[%s840_s7 + $0x70] sm:$0xff] }
  0x1a   : > { %606 = vmatpush.msra.mxu3 %v225_v2  ;;  %605 = vmatpush.msra.mxu2 %v225_v2  ;;  %v199_v12 = vld [vmem:[%s840_s7] sm:$0xff]  ;;  %v208_v17 = vld [vmem:[%s840_s7 + $0x48] sm:$0xff]  ;;  %v201_v18 = vld [vmem:[%s840_s7 + $0x10] sm:$0xff] }
  0x1b   : > { %300 = vmatpush.msra.mxu0 %v225_v2  ;;  %v207_v14 = vld [vmem:[%s840_s7 + $0x40] sm:$0xff]  ;;  %v214_v19 = vld [vmem:[%s840_s7 + $0x78] sm:$0xff]  ;;  %v209_v20 = vld [vmem:[%s840_s7 + $0x50] sm:$0xff] }
  0x1c   : > { %608 = vmatpush.msra.mxu3 %v224_v3  ;;  %607 = vmatpush.msra.mxu2 %v224_v3  ;;  %v202_v21 = vld [vmem:[%s840_s7 + $0x18] sm:$0xff]  ;;  %v215_v22 = vld [vmem:[%s840_s7 + $0x80] sm:$0xff]  ;;  %v216_v25 = vld [vmem:[%s840_s7 + $0x88] sm:$0xff] }
  0x1d   : > { %301 = vmatpush.msra.mxu0 %v224_v3  ;;  %v210_v23 = vld [vmem:[%s840_s7 + $0x58] sm:$0xff]  ;;  %v203_v24 = vld [vmem:[%s840_s7 + $0x20] sm:$0xff]  ;;  %v204_v26 = vld [vmem:[%s840_s7 + $0x28] sm:$0xff] }
  0x1e   : > { %610 = vmatpush.msra.mxu3 %v223_v4  ;;  %609 = vmatpush.msra.mxu2 %v223_v4  ;;  %v217_v27 = vld [vmem:[%s840_s7 + $0x90] sm:$0xff]  ;;  %v892_v38 = vld [vmem:[%s966_s2] ss:$0 sm:$0xff] }
  0x1f   : > { %302 = vmatpush.msra.mxu0 %v223_v4  ;;  %v205_v28 = vld [vmem:[%s840_s7 + $0x30] sm:$0xff]  ;;  %s685_s7 = scalar_lea.hbm %s684_s5, 2 }
  0x20   : > { %612 = vmatpush.msra.mxu3 %v222_v5  ;;  %611 = vmatpush.msra.mxu2 %v222_v5  ;;  %p686_p11 = scmp.ne.s32.totalorder %s684_s5, %s685_s7  ;;  %p691_p1 = scmp.lt.s32.totalorder %s689_s9, %s685_s7 }
  0x21   : > { %303 = vmatpush.msra.mxu0 %v222_v5 }
  0x22   : > { %614 = vmatpush.msra.mxu3 %v221_v6  ;;  %613 = vmatpush.msra.mxu2 %v221_v6  ;;  %p687_p12 = pnand %p686_p11, %p799_p5  ;;  %p692_p2 = por %p691_p1, %p690_p0 }
  0x23   : > { %304 = vmatpush.msra.mxu0 %v221_v6 }
  0x24   : > { %616 = vmatpush.msra.mxu3 %v220_v7  ;;  %615 = vmatpush.msra.mxu2 %v220_v7  ;;  %p688_p13 = pneg %p687_p12 }
  0x25   : > { %305 = vmatpush.msra.mxu0 %v220_v7 }
  0x26   : > { %618 = vmatpush.msra.mxu3 %v219_v8  ;;  %617 = vmatpush.msra.mxu2 %v219_v8  ;;  %p693_p3 = pnand %p692_p2, %p688_p13 }
  0x27   : > { %306 = vmatpush.msra.mxu0 %v219_v8 }
  0x28   : > { %620 = vmatpush.msra.mxu3 %v218_v9  ;;  %619 = vmatpush.msra.mxu2 %v218_v9 }
  0x29   : > { %590 = vmatmul.msk.f32.vlgmr.msra.gmra.mxu3 %vm230_vm1, %v211_v10  ;;  %585 = vmatmul.msk.f32.vlgmr.msra.gmra.mxu2 %vm230_vm1, %v206_v11 }
  0x2a   : > { %307 = vmatpush.msra.mxu0 %v218_v9 }
  0x2b   : > { %578 = vmatmul.msk.f32.vlgmr.msra.gmra.mxu0 %vm230_vm1, %v199_v12 }
  0x31   : > { %591 = vmatmul.msk.f32.gmra.mxu3 %vm230_vm1, %v212_v13  ;;  %586 = vmatmul.msk.f32.gmra.mxu2 %vm230_vm1, %v207_v14 }
  0x33   : > { %579 = vmatmul.msk.f32.gmra.mxu0 %vm230_vm1, %v200_v15 }
  0x39   : > { %592 = vmatmul.msk.f32.gmra.mxu3 %vm230_vm1, %v213_v16  ;;  %587 = vmatmul.msk.f32.gmra.mxu2 %vm230_vm1, %v208_v17 }
  0x3b   : > { %580 = vmatmul.msk.f32.gmra.mxu0 %vm230_vm1, %v201_v18 }
  0x41   : > { %593 = vmatmul.msk.f32.gmra.mxu3 %vm230_vm1, %v214_v19  ;;  %588 = vmatmul.msk.f32.gmra.mxu2 %vm230_vm1, %v209_v20 }
  0x43   : > { %581 = vmatmul.msk.f32.gmra.mxu0 %vm230_vm1, %v202_v21 }
  0x49   : > { %594 = vmatmul.msk.f32.gmra.mxu3 %vm230_vm1, %v215_v22  ;;  %589 = vmatmul.msk.f32.gmra.mxu2 %vm230_vm1, %v210_v23 }
  0x4b   : > { %582 = vmatmul.msk.f32.gmra.mxu0 %vm230_vm1, %v203_v24  ;;  %v404_v24 = vld [vmem:[%s966_s2 + $0x1] sm:$0x1] }
  0x51   : > { %595 = vmatmul.msk.f32.gmra.mxu3 %vm230_vm1, %v216_v25 }
  0x53   : > { %583 = vmatmul.msk.f32.gmra.mxu0 %vm230_vm1, %v204_v26 }
  0x59   : > { %596 = vmatmul.msk.f32.gmra.mxu3 %vm230_vm1, %v217_v27 }
  0x5b   : > { %584 = vmatmul.msk.f32.gmra.mxu0 %vm230_vm1, %v205_v28 }
  0xa8   : > { %v883_v29 = vpop.f32.mrf.mxu0 }
  0xac   : > { %v345_v30 = vpop.f32.mrf.mxu3  ;;  %v330_v31 = vpop.f32.mrf.mxu2 }
  0xad   : > { %v346_v49 = vadd.f32 %v892_v38, %v345_v30  ;;  %v331_v9 = vadd.f32 %v892_v38, %v330_v31 }
  0xaf   : > { %v378_v54 = vmul.f32 0.2, %v346_v49  ;;  %v373_v16 = vmul.f32 0.2, %v331_v9 }
  0xb0   : > { %v885_v32 = vpop.f32.mrf.mxu0 }
  0xb1   : > { %v397_v60 = vmax.f32 %v346_v49, %v378_v54  ;;  %v392_v22 = vmax.f32 %v331_v9, %v373_v16 }
  0xb4   : > { %v348_v33 = vpop.f32.mrf.mxu3  ;;  %v333_v34 = vpop.f32.mrf.mxu2 }
  0xb5   : > { %v349_v45 = vadd.f32 %v892_v38, %v348_v33  ;;  %v334_v3 = vadd.f32 %v892_v38, %v333_v34 }
  0xb7   : > { %v379_v50 = vmul.f32 0.2, %v349_v45  ;;  %v374_v10 = vmul.f32 0.2, %v334_v3 }
  0xb8   : > { %v887_v35 = vpop.f32.mrf.mxu0 }
  0xb9   : > { %v398_v55 = vmax.f32 %v349_v45, %v379_v50  ;;  %v393_v18 = vmax.f32 %v334_v3, %v374_v10  ;;  %v316_v33 = vadd.f32 %v892_v38, %v887_v35  ;;  %v406_v35 = vstv %s405_s13 }
  0xbc   : > { %v351_v36 = vpop.f32.mrf.mxu3  ;;  %v336_v37 = vpop.f32.mrf.mxu2 }
  0xbd   : > { %v352_v42 = vadd.f32 %v892_v38, %v351_v36  ;;  %v337_v62 = vadd.f32 %v892_v38, %v336_v37  ;;  %v313_v37 = vadd.f32 %v892_v38, %v885_v32 }
  0xbf   : > { %v380_v46 = vmul.f32 0.2, %v352_v42  ;;  %v375_v4 = vmul.f32 0.2, %v337_v62 }
  0xc0   : > { %v894_v39 = vpop.f32.mrf.mxu0 }
  0xc1   : > { %v399_v51 = vmax.f32 %v352_v42, %v380_v46  ;;  %v394_v12 = vmax.f32 %v337_v62, %v375_v4  ;;  %v319_v28 = vadd.f32 %v892_v38, %v894_v39  ;;  %v310_v42 = vadd.f32 %v892_v38, %v883_v29 }
  0xc3   : > { %v369_v34 = vmul.f32 0.2, %v319_v28 }
  0xc4   : > { %v354_v40 = vpop.f32.mrf.mxu3  ;;  %v339_v41 = vpop.f32.mrf.mxu2 }
  0xc5   : > { %v355_v43 = vadd.f32 %v892_v38, %v354_v40  ;;  %v340_v58 = vadd.f32 %v892_v38, %v339_v41  ;;  %v368_v40 = vmul.f32 0.2, %v316_v33  ;;  %v388_v41 = vmax.f32 %v319_v28, %v369_v34 }
  0xc7   : > { %v381_v44 = vmul.f32 0.2, %v355_v43  ;;  %v376_v63 = vmul.f32 0.2, %v340_v58  ;;  %v387_v39 = vmax.f32 %v316_v33, %v368_v40 }
  0xc8   : > { %v321_v53 = vpop.f32.mrf.mxu0 }
  0xc9   : > { %v400_v47 = vmax.f32 %v355_v43, %v381_v44  ;;  %v395_v6 = vmax.f32 %v340_v58, %v376_v63  ;;  %v322_v25 = vadd.f32 %v892_v38, %v321_v53  ;;  %v367_v43 = vmul.f32 0.2, %v313_v37 }
  0xca   : > { %v366_v44 = vmul.f32 0.2, %v310_v42 }
  0xcb   : > { %407 = vmatpush.xpose.msra.mxu1 %v400_v47  ;;  %v370_v30 = vmul.f32 0.2, %v322_v25  ;;  %v386_v45 = vmax.f32 %v313_v37, %v367_v43 }
  0xcc   : > { %v357_v48 = vpop.f32.mrf.mxu3  ;;  %v342_v52 = vpop.f32.mrf.mxu2  ;;  %v385_v46 = vmax.f32 %v310_v42, %v366_v44 }
  0xcd   : > { %v343_v56 = vadd.f32 %v892_v38, %v342_v52  ;;  %v358_v11 = vadd.f32 %v892_v38, %v357_v48  ;;  %v389_v36 = vmax.f32 %v322_v25, %v370_v30 }
  0xcf   : > { %408 = vmatpush.xpose.msra.mxu1 %v399_v51  ;;  %v377_v59 = vmul.f32 0.2, %v343_v56  ;;  %v382_v17 = vmul.f32 0.2, %v358_v11 }
  0xd0   : > { %v324_v61 = vpop.f32.mrf.mxu0 }
  0xd1   : > { %v396_v0 = vmax.f32 %v343_v56, %v377_v59  ;;  %v325_v20 = vadd.f32 %v892_v38, %v324_v61  ;;  %v401_v23 = vmax.f32 %v358_v11, %v382_v17 }
  0xd3   : > { %409 = vmatpush.xpose.msra.mxu1 %v398_v55  ;;  %v371_v26 = vmul.f32 0.2, %v325_v20 }
  0xd4   : > { %v360_v57 = vpop.f32.mrf.mxu3 }
  0xd5   : > { %v361_v1 = vadd.f32 %v892_v38, %v360_v57  ;;  %v390_v31 = vmax.f32 %v325_v20, %v371_v26 }
  0xd7   : > { %410 = vmatpush.xpose.msra.mxu1 %v397_v60  ;;  %v383_v7 = vmul.f32 0.2, %v361_v1 }
  0xd8   : > { %v327_v14 = vpop.f32.mrf.mxu0 }
  0xd9   : > { %v402_v15 = vmax.f32 %v361_v1, %v383_v7  ;;  %v328_v19 = vadd.f32 %v892_v38, %v327_v14  ;;  %v491_v7 = vlaneseq }
  0xdb   : > { %411 = vmatpush.xpose.msra.mxu1 %v396_v0  ;;  %v372_v21 = vmul.f32 0.2, %v328_v19  ;;  %vm493_vm11 = vcmp.lt.s32.totalorder %v491_v7, 152 }
  0xdc   : > { %v363_v2 = vpop.f32.mrf.mxu3 }
  0xdd   : > { %v364_v5 = vadd.f32 %v892_v38, %v363_v2  ;;  %v391_v27 = vmax.f32 %v328_v19, %v372_v21 }
  0xdf   : > { %v384_v8 = vmul.f32 0.2, %v364_v5  ;;  %412 = vmatpush.xpose.msra.mxu1 %v395_v6 }
  0xe1   : > { %v403_v13 = vmax.f32 %v364_v5, %v384_v8 }
  0xe3   : > { %413 = vmatpush.xpose.msra.mxu1 %v394_v12  ;;  %440 = vmatpush.xpose.msrb.mxu2 %v403_v13 }
  0xe7   : > { %414 = vmatpush.xpose.msra.mxu1 %v393_v18  ;;  %441 = vmatpush.xpose.msrb.mxu2 %v402_v15 }
  0xeb   : > { %415 = vmatpush.xpose.msra.mxu1 %v392_v22  ;;  %442 = vmatpush.xpose.msrb.mxu2 %v401_v23 }
  0xee   : > { %443 = vmatmul.f32.vlgmr.msrb.gmra.mxu2 %v404_v24 }
  0xef   : > { %416 = vmatpush.xpose.msra.mxu1 %v391_v27 }
  0xf3   : > { %417 = vmatpush.xpose.msra.mxu1 %v390_v31 }
  0xf7   : > { %418 = vmatpush.xpose.msra.mxu1 %v389_v36 }
  0xfb   : > { %419 = vmatpush.xpose.msra.mxu1 %v388_v41 }
  0xff   : > { %420 = vmatpush.xpose.msra.mxu1 %v387_v39 }
 0x103   : > { %421 = vmatpush.xpose.msra.mxu1 %v386_v45 }
 0x107   : > { %422 = vmatpush.xpose.msra.mxu1 %v385_v46 }
 0x10a   : > { %423 = vmatmul.f32.vlgmr.msra.gmra.mxu1 %v404_v24 }
 0x171   : > { %v444_v47 = vpop.f32.mrf.mxu2 }
 0x172   : > { %v445_v48 = vadd.f32 %v444_v47, %v406_v35 }
 0x174   : > { %v448_v32 = vsub.f32 0.0, %v445_v48 }
 0x176   : > { %v451_v49 = vmul.f32 1.442695, %v448_v32 }
 0x178   : > { %661 = vpow2.f32 %v451_v49 }
 0x17e   : > { %v662_v50 = vpop.eup %661 }
 0x17f   : > { %v454_v51 = vadd.f32 1.0, %v662_v50 }
 0x181   : > { %663 = vrcp.f32 %v454_v51  ;;  %vm475_vm2 = vweird.f32 %v454_v51  ;;  %v481_v60 = vand.u32 2147483648, %v454_v51  ;;  %v479_v62 = vand.u32 2147483647, %v454_v51 }
 0x183   : > { %v482_v1 = vor.u32 1.1754944e-38, %v481_v60  ;;  %vm480_vm5 = vcmp.eq.f32.partialorder %v479_v62, 8.507059e+37 }
 0x187   : > { %v424_v29 = vpop.f32.mrf.mxu1  ;;  %v664_v54 = vpop.eup %663 }
 0x188   : > { %v425_v38 = vadd.f32 %v424_v29, %v406_v35  ;;  %v471_v55 = vmul.f32 %v664_v54, %v454_v51  ;;  %vm476_vm3 = vweird.f32 %v664_v54 }
 0x189   : > { %vm477_vm4 = vmor %vm475_vm2, %vm476_vm3 }
 0x18a   : > { %v447_v52 = vsub.f32 0.0, %v425_v38  ;;  %v472_v57 = vsub.f32 1.0, %v471_v55 }
 0x18c   : > { %v449_v53 = vmul.f32 1.442695, %v447_v52  ;;  %v473_v59 = vmul.f32 %v664_v54, %v472_v57 }
 0x18e   : > { %665 = vpow2.f32 %v449_v53  ;;  %v474_v61 = vadd.f32 %v664_v54, %v473_v59 }
 0x190   : > { %v478_v3 = vsel %vm477_vm4, %v664_v54, %v474_v61 }
 0x191   : > { %v483_v8 = vsel %vm480_vm5, %v482_v1, %v478_v3 }
 0x192   : > { %v487_v12 = vrot.slane %v483_v8, 7 }
 0x194   : > { %v666_v56 = vpop.eup %665 }
 0x195   : > { %v453_v58 = vadd.f32 1.0, %v666_v56 }
 0x197   : > { %667 = vrcp.f32 %v453_v58  ;;  %v466_v4 = vand.u32 2147483648, %v453_v58  ;;  %v464_v6 = vand.u32 2147483647, %v453_v58  ;;  %vm460_vm7 = vweird.f32 %v453_v58 }
 0x199   : > { %v467_v10 = vor.u32 1.1754944e-38, %v466_v4  ;;  %vm465_vm10 = vcmp.eq.f32.partialorder %v464_v6, 8.507059e+37 }
 0x19d   : > { %v668_v63 = vpop.eup %667 }
 0x19e   : > { %v456_v0 = vmul.f32 %v668_v63, %v453_v58  ;;  %vm461_vm6 = vweird.f32 %v668_v63 }
 0x19f   : > { %vm462_vm8 = vmor %vm460_vm7, %vm461_vm6 }
 0x1a0   : > { %v457_v2 = vsub.f32 1.0, %v456_v0 }
 0x1a2   : > { %v458_v5 = vmul.f32 %v668_v63, %v457_v2 }
 0x1a4   : > { %v459_v9 = vadd.f32 %v668_v63, %v458_v5 }
 0x1a6   : > { %v463_v11 = vsel %vm462_vm8, %v668_v63, %v459_v9 }
 0x1a7   : > { %v468_v13 = vsel %vm465_vm10, %v467_v10, %v463_v11 }
 0x1a8   : > { %v489_v14 = vsel %vm488_vm9, %v468_v13, %v487_v12 }
 0x1a9   : > { %495 = vst.msk [vmem:[%s192_s28] sm:$0x3] %vm493_vm11, %v489_v14 }
 0x1aa   : > { %696 = shalt.err (!%p693_p3)
}
 0x1ab   : > { %621 = dma.vmem_to_hbm [thread:$0]  (%p799_p5), %s510_s29, 32, %s512_s3, %s497_s30  }
 0x1ac PF: > { %p627_p4 = scmp.ge.s32.totalorder %s731_s20, 2  ;;  %s523_s12 = sand.u32 1, %s719_s17  }
 0x1ad   : > { %s524_s13 = scalar_lea.sflag [#allocation4], %s523_s12 }
 0x1ae   : > { %p624_p7 = pnand %p627_p4, %p803_p6 }
 0x1b0   : > { %p625_p8 = pneg %p624_p7 }
 0x1b2   : > { %714 = dma.done.wait (%p625_p8), %s524_s13, 32  }
 0x1b3   : > { %716 = vsyncadd (%p625_p8), %s524_s13, 4294967264  ;;  %p15_p9 = scmp.ge.s32.totalorder %s786_s22, 4   ;;  %s971_s17 = smov %s723_s18 }
 0x1b4   : > { %s972_s18 = smov %s727_s19  ;;  %s973_s19 = smov %s797_s25 }
 0x1b5   : > { %s974_s20 = smov %s786_s22  ;;  %17 = sbr.rel (!%p15_p9) target bundleno = 5 (0x5), region = 71 }
 0x1ba   :  { %530 = vsyncpa [#allocation4], 1 }
 0x1bb   :  { %532 = vsyncpa [#allocation4 + $0x1], 1 }

</bundles_post_ra>
